<compile_context>
chip_gen: v7x
topology: tpu7x:2x2x1
jax: 0.10.0
libtpu: 0.0.40
codegen_flags: <defaults>
</compile_context>

<pallas_src>
import functools

import jax
import jax.numpy as jnp
from jax.experimental import pallas as pl
from jax.experimental.pallas import tpu as pltpu


# --------------------------------------------------------------------------- #
# Kernel
# --------------------------------------------------------------------------- #
def _additive_attention_kernel(
    q_ref, k_ref, v_ref,
    wq_ref, wk_ref, wv_ref,
    bq_ref, bk_ref, bv_ref,
    ws_ref, bs_ref,
    out_ref, attn_ref,
    scores_ref,
    *, lk_blk, score_dtype,
):
    bt, lq, d = q_ref.shape
    lk = k_ref.shape[1]

    # ---- Projections: fused over the batch block so each MXU matmul sees a
    # (bt*L, D) row tile (weights pre-transposed in the wrapper, f32 accum).
    # Reshapes below keep the last (lane) dim, so they are layout no-ops.
    q2 = q_ref[...].reshape(bt * lq, d)
    k2 = k_ref[...].reshape(bt * lk, d)
    v2 = v_ref[...].reshape(bt * lk, d)
    pq = jnp.dot(q2, wq_ref[...], preferred_element_type=jnp.float32) + bq_ref[...]
    pk = jnp.dot(k2, wk_ref[...], preferred_element_type=jnp.float32) + bk_ref[...]
    pv = jnp.dot(v2, wv_ref[...], preferred_element_type=jnp.float32) + bv_ref[...]
    pq = pq.reshape(bt, lq, d)
    pk = pk.reshape(bt, lk, d)
    pv = pv.reshape(bt, lk, d)

    ws = ws_ref[...]          # (1, D) score projection weight
    bs = bs_ref[0]            # scalar score bias, read from SMEM (scalar path)

    # ---- Additive scores, tiled over the key axis so the 4-D tanh
    # intermediate stays bounded at (bt, lq, lk_blk, d).
    pq_c = pq.astype(score_dtype)
    pk_c = pk.astype(score_dtype)
    n_kb = lk // lk_blk
    for kb in range(n_kb):            # static unroll; n_kb is small by construction
        lo = kb * lk_blk
        pk_blk = pk_c[:, lo:lo + lk_blk, :]
        t = jnp.tanh(pq_c[:, :, None, :] + pk_blk[:, None, :, :])
        # TODO(synk): at D=32 this D-reduction is a 32/128-lane VALU+XLU reduce;
        # an MXU (bt*lq*lk_blk, D) @ (D, 1) formulation needs a lane-changing
        # reshape of the (N, 1) result and was left out for lowering robustness.
        s_blk = jnp.sum(t.astype(jnp.float32) * ws, axis=-1) + bs
        scores_ref[:, :, lo:lo + lk_blk] = s_blk

    # ---- Softmax over keys + weighted sum of projected values.
    # TODO(synk): optional `mask` argument (masked_fill with -1e9) not wired in;
    # the reference forward is exercised with mask=None.
    scores = scores_ref[...]                              # (bt, lq, lk), f32
    m = jnp.max(scores, axis=-1, keepdims=True)
    e = jnp.exp(scores - m)
    denom = jnp.sum(e, axis=-1, keepdims=True)
    attn = e * pl.reciprocal(denom, approx=True)          # EUP vrcp, idle slot

    attended = jnp.einsum('bqk,bkd->bqd', attn, pv,
                          preferred_element_type=jnp.float32)
    out_ref[...] = attended.astype(out_ref.dtype)
    # NOTE: attn is a required module output; with small Lk its lane axis is
    # narrow (masked stores).  Callers not consuming it should drop it.
    attn_ref[...] = attn.astype(attn_ref.dtype)


# --------------------------------------------------------------------------- #
# Tiling heuristics
# --------------------------------------------------------------------------- #
def _choose_batch_tile(B, Lq):
    # Target >=128 rows (bt*Lq) feeding each projection matmul (MXU occupancy)...
    bt = max(1, min(B, (128 + max(Lq, 1) - 1) // max(Lq, 1)))
    # ...but keep the grid at >=2 steps when B allows, so both v7x TensorCores
    # get work on the "parallel" batch axis (neutral on v5e/v6e).
    if B >= 2 and B // bt < 2:
        bt = max(1, B // 2)
    while B % bt:                     # uniform blocks, no ragged tail
        bt -= 1
    return bt


def _choose_key_block(bt, Lq, Lk, D, *, budget_bytes=2 * 2**20):
    # Bound the (bt, Lq, lk_blk, D) tanh intermediate to ~2 MiB per step.
    per_key = max(1, bt * Lq * D * 4)
    blk = max(1, min(Lk, budget_bytes // per_key))
    while Lk % blk:
        blk -= 1
    return blk


# --------------------------------------------------------------------------- #
# Wrapper
# --------------------------------------------------------------------------- #
def additive_attention(query, key, value, params, *, score_dtype=jnp.float32):
    """Forward pass of AdditiveAttention (mask=None). Returns (attended, attn)."""
    B, Lq, D = query.shape
    Lk = key.shape[1]

    bt = _choose_batch_tile(B, Lq)
    lk_blk = _choose_key_block(bt, Lq, Lk, D)

    # Pre-transpose nn.Linear weights (out,in) -> (in,out) so the kernel does x @ W.
    wq_t = params["wq"].T
    wk_t = params["wk"].T
    wv_t = params["wv"].T
    bq = params["bq"].reshape(1, D)
    bk = params["bk"].reshape(1, D)
    bv = params["bv"].reshape(1, D)
    ws = params["ws"].reshape(1, D)                       # score_proj weight
    bs = params["bs"].reshape(1).astype(jnp.float32)      # score_proj bias -> SMEM

    # Constant-index-map blocks (weights/biases): Pallas does not re-fetch a
    # block whose index is unchanged between consecutive grid steps.
    rep2 = lambda shape: pl.BlockSpec(shape, lambda b: (0, 0))

    grid_spec = pltpu.PrefetchScalarGridSpec(
        num_scalar_prefetch=0,
        grid=(B // bt,),
        in_specs=[
            pl.BlockSpec((bt, Lq, D), lambda b: (b, 0, 0)),
            pl.BlockSpec((bt, Lk, D), lambda b: (b, 0, 0)),
            pl.BlockSpec((bt, Lk, D), lambda b: (b, 0, 0)),
            rep2((D, D)), rep2((D, D)), rep2((D, D)),
            rep2((1, D)), rep2((1, D)), rep2((1, D)),
            rep2((1, D)),
            pl.BlockSpec(memory_space=pltpu.MemorySpace.SMEM),  # scalar bias bs
        ],
        out_specs=[
            pl.BlockSpec((bt, Lq, D), lambda b: (b, 0, 0)),
            pl.BlockSpec((bt, Lq, Lk), lambda b: (b, 0, 0)),
        ],
        scratch_shapes=[pltpu.VMEM((bt, Lq, Lk), jnp.float32)],
    )

    out_shapes = (
        jax.ShapeDtypeStruct((B, Lq, D), jnp.float32),
        jax.ShapeDtypeStruct((B, Lq, Lk), jnp.float32),
    )

    # Rough per-step VMEM footprint -> explicit scoped-VMEM limit (v5e default
    # is only 16 MiB; clamp at 64 MiB for v7x's smaller physical VMEM).
    step_bytes = 4 * (
        2 * bt * (Lq + 2 * Lk) * D          # double-buffered q/k/v tiles
        + 2 * bt * Lq * (D + Lk)            # double-buffered out/attn tiles
        + 3 * D * D + 4 * D                 # weights + biases (not re-fetched)
        + 3 * bt * (Lq + 2 * Lk) * D        # projected pq/pk/pv
        + bt * Lq * Lk                      # scores scratch
        + 2 * bt * Lq * lk_blk * D          # tanh block (+ f32 upcast copy)
    )
    vmem_limit = int(min(64 * 2**20, max(32 * 2**20, 2 * step_bytes)))

    kernel = functools.partial(
        _additive_attention_kernel, lk_blk=lk_blk, score_dtype=score_dtype)

    return pl.pallas_call(
        kernel,
        out_shape=out_shapes,
        grid_spec=grid_spec,
        compiler_params=pltpu.CompilerParams(
            dimension_semantics=("parallel",),   # batch-block axis -> megacore
            vmem_limit_bytes=vmem_limit,
        ),
    )(query, key, value, wq_t, wk_t, wv_t, bq, bk, bv, ws, bs)


# --------------------------------------------------------------------------- #
# Pure-JAX reference (mirrors the PyTorch module, mask=None)
# --------------------------------------------------------------------------- #
def additive_attention_ref(query, key, value, params):
    pq = query @ params["wq"].T + params["bq"]
    pk = key @ params["wk"].T + params["bk"]
    pv = value @ params["wv"].T + params["bv"]
    scores = jnp.squeeze(
        jnp.tanh(pq[..., :, None, :] + pk[..., None, :, :]) @ params["ws"].T
        + params["bs"], -1)                                   # (B, Lq, Lk)
    attn = jax.nn.softmax(scores, axis=-1)
    attended = jnp.matmul(attn, pv)                            # (B, Lq, D)
    return attended, attn


def init_params(key, d_model):
    # nn.Linear default-style init: uniform(-1/sqrt(d), 1/sqrt(d)), deterministic.
    keys = jax.random.split(key, 8)
    bound = 1.0 / jnp.sqrt(d_model)
    u = lambda k, shape: jax.random.uniform(k, shape, jnp.float32, -bound, bound)
    return {
        "wq": u(keys[0], (d_model, d_model)), "bq": u(keys[1], (d_model,)),
        "wk": u(keys[2], (d_model, d_model)), "bk": u(keys[3], (d_model,)),
        "wv": u(keys[4], (d_model, d_model)), "bv": u(keys[5], (d_model,)),
        "ws": u(keys[6], (1, d_model)),       "bs": u(keys[7], (1,)),
    }


if __name__ == "__main__":
    B, Lq, Lk, D = 2, 8, 8, 32
    root = jax.random.PRNGKey(0)
    kq, kk, kv, kp = jax.random.split(root, 4)

    query = jax.random.normal(kq, (B, Lq, D), jnp.float32)
    key = jax.random.normal(kk, (B, Lk, D), jnp.float32)
    value = jax.random.normal(kv, (B, Lk, D), jnp.float32)
    params = init_params(kp, D)

    # f32 score path by default; pass score_dtype=jnp.bfloat16 on v6e/v7x for
    # ~2x transcendental throughput in the tanh/score phase.
    attended, weights = additive_attention(query, key, value, params)
    jax.block_until_ready((attended, weights))

    ref_attended, ref_weights = additive_attention_ref(query, key, value, params)
    assert jnp.allclose(attended, ref_attended, rtol=2e-2, atol=2e-2), \
        float(jnp.max(jnp.abs(attended - ref_attended)))
    assert jnp.allclose(weights, ref_weights, rtol=2e-2, atol=2e-2), \
        float(jnp.max(jnp.abs(weights - ref_weights)))

    print("KERNEL_OK")
</pallas_src>

<mosaic_0001>
module attributes {stable_mosaic.version = 11 : i64} {
  func.func @_additive_attention_kernel(%arg0: i32, %arg1: memref<1x8x32xf32, #tpu.memory_space<vmem>>, %arg2: memref<1x8x32xf32, #tpu.memory_space<vmem>>, %arg3: memref<1x8x32xf32, #tpu.memory_space<vmem>>, %arg4: memref<32x32xf32, #tpu.memory_space<vmem>>, %arg5: memref<32x32xf32, #tpu.memory_space<vmem>>, %arg6: memref<32x32xf32, #tpu.memory_space<vmem>>, %arg7: memref<1x32xf32, #tpu.memory_space<vmem>>, %arg8: memref<1x32xf32, #tpu.memory_space<vmem>>, %arg9: memref<1x32xf32, #tpu.memory_space<vmem>>, %arg10: memref<1x32xf32, #tpu.memory_space<vmem>>, %arg11: memref<1xf32, #tpu.memory_space<smem>>, %arg12: memref<1x8x32xf32, #tpu.memory_space<vmem>>, %arg13: memref<1x8x8xf32, #tpu.memory_space<vmem>>, %arg14: memref<1x8x8xf32, #tpu.memory_space<vmem>>) attributes {dimension_semantics = [#tpu.dimension_semantics<parallel>], iteration_bounds = array<i64: 2>, scalar_prefetch = 0 : i64, scratch_operands = 1 : i64, tpu.core_type = #tpu.core_type<tc>, window_params = [{transform_indices = @transform_0, window_bounds = array<i64: 1, 8, 32>}, {transform_indices = @transform_1, window_bounds = array<i64: 1, 8, 32>}, {transform_indices = @transform_2, window_bounds = array<i64: 1, 8, 32>}, {pipeline_mode = #tpu.pipeline_mode<synchronous>, transform_indices = @transform_3, window_bounds = array<i64: 32, 32>}, {pipeline_mode = #tpu.pipeline_mode<synchronous>, transform_indices = @transform_4, window_bounds = array<i64: 32, 32>}, {pipeline_mode = #tpu.pipeline_mode<synchronous>, transform_indices = @transform_5, window_bounds = array<i64: 32, 32>}, {pipeline_mode = #tpu.pipeline_mode<synchronous>, transform_indices = @transform_6, window_bounds = array<i64: 1, 32>}, {pipeline_mode = #tpu.pipeline_mode<synchronous>, transform_indices = @transform_7, window_bounds = array<i64: 1, 32>}, {pipeline_mode = #tpu.pipeline_mode<synchronous>, transform_indices = @transform_8, window_bounds = array<i64: 1, 32>}, {pipeline_mode = #tpu.pipeline_mode<synchronous>, transform_indices = @transform_9, window_bounds = array<i64: 1, 32>}, {transform_indices = @transform_10, window_bounds = array<i64: 1>}, {transform_indices = @transform_11, window_bounds = array<i64: 1, 8, 32>}, {transform_indices = @transform_12, window_bounds = array<i64: 1, 8, 8>}]} {
    %c0 = arith.constant 0 : index
    %c0_0 = arith.constant 0 : index
    %c0_1 = arith.constant 0 : index
    %0 = vector.load %arg1[%c0, %c0_0, %c0_1] : memref<1x8x32xf32, #tpu.memory_space<vmem>>, vector<1x8x32xf32>
    %1 = vector.shape_cast %0 : vector<1x8x32xf32> to vector<8x32xf32>
    %c0_2 = arith.constant 0 : index
    %c0_3 = arith.constant 0 : index
    %c0_4 = arith.constant 0 : index
    %2 = vector.load %arg2[%c0_2, %c0_3, %c0_4] : memref<1x8x32xf32, #tpu.memory_space<vmem>>, vector<1x8x32xf32>
    %3 = vector.shape_cast %2 : vector<1x8x32xf32> to vector<8x32xf32>
    %c0_5 = arith.constant 0 : index
    %c0_6 = arith.constant 0 : index
    %c0_7 = arith.constant 0 : index
    %4 = vector.load %arg3[%c0_5, %c0_6, %c0_7] : memref<1x8x32xf32, #tpu.memory_space<vmem>>, vector<1x8x32xf32>
    %5 = vector.shape_cast %4 : vector<1x8x32xf32> to vector<8x32xf32>
    %c0_8 = arith.constant 0 : index
    %c0_9 = arith.constant 0 : index
    %6 = vector.load %arg4[%c0_8, %c0_9] : memref<32x32xf32, #tpu.memory_space<vmem>>, vector<32x32xf32>
    %cst = arith.constant dense<0.000000e+00> : vector<8x32xf32>
    %7 = tpu.matmul %1, %6, %cst {dimension_numbers = #tpu.dot_dimension_numbers<[1], [0], [0], [1], [0, 0, 1, 1], [], []>} : vector<8x32xf32>, vector<32x32xf32>, vector<8x32xf32> -> vector<8x32xf32>
    %c0_10 = arith.constant 0 : index
    %c0_11 = arith.constant 0 : index
    %8 = vector.load %arg7[%c0_10, %c0_11] : memref<1x32xf32, #tpu.memory_space<vmem>>, vector<1x32xf32>
    %9 = vector.broadcast %8 : vector<1x32xf32> to vector<8x32xf32>
    %10 = arith.addf %7, %9 : vector<8x32xf32>
    %c0_12 = arith.constant 0 : index
    %c0_13 = arith.constant 0 : index
    %11 = vector.load %arg5[%c0_12, %c0_13] : memref<32x32xf32, #tpu.memory_space<vmem>>, vector<32x32xf32>
    %cst_14 = arith.constant dense<0.000000e+00> : vector<8x32xf32>
    %12 = tpu.matmul %3, %11, %cst_14 {dimension_numbers = #tpu.dot_dimension_numbers<[1], [0], [0], [1], [0, 0, 1, 1], [], []>} : vector<8x32xf32>, vector<32x32xf32>, vector<8x32xf32> -> vector<8x32xf32>
    %c0_15 = arith.constant 0 : index
    %c0_16 = arith.constant 0 : index
    %13 = vector.load %arg8[%c0_15, %c0_16] : memref<1x32xf32, #tpu.memory_space<vmem>>, vector<1x32xf32>
    %14 = vector.broadcast %13 : vector<1x32xf32> to vector<8x32xf32>
    %15 = arith.addf %12, %14 : vector<8x32xf32>
    %c0_17 = arith.constant 0 : index
    %c0_18 = arith.constant 0 : index
    %16 = vector.load %arg6[%c0_17, %c0_18] : memref<32x32xf32, #tpu.memory_space<vmem>>, vector<32x32xf32>
    %cst_19 = arith.constant dense<0.000000e+00> : vector<8x32xf32>
    %17 = tpu.matmul %5, %16, %cst_19 {dimension_numbers = #tpu.dot_dimension_numbers<[1], [0], [0], [1], [0, 0, 1, 1], [], []>} : vector<8x32xf32>, vector<32x32xf32>, vector<8x32xf32> -> vector<8x32xf32>
    %c0_20 = arith.constant 0 : index
    %c0_21 = arith.constant 0 : index
    %18 = vector.load %arg9[%c0_20, %c0_21] : memref<1x32xf32, #tpu.memory_space<vmem>>, vector<1x32xf32>
    %19 = vector.broadcast %18 : vector<1x32xf32> to vector<8x32xf32>
    %20 = arith.addf %17, %19 : vector<8x32xf32>
    %21 = vector.shape_cast %10 : vector<8x32xf32> to vector<1x8x32xf32>
    %22 = vector.shape_cast %15 : vector<8x32xf32> to vector<1x8x32xf32>
    %23 = vector.shape_cast %20 : vector<8x32xf32> to vector<1x8x32xf32>
    %c0_22 = arith.constant 0 : index
    %c0_23 = arith.constant 0 : index
    %24 = vector.load %arg10[%c0_22, %c0_23] : memref<1x32xf32, #tpu.memory_space<vmem>>, vector<1x32xf32>
    %c0_24 = arith.constant 0 : index
    %25 = memref.load %arg11[%c0_24] : memref<1xf32, #tpu.memory_space<smem>>
    %26 = vector.shape_cast %21 : vector<1x8x32xf32> to vector<1x8x1x32xf32>
    %27 = vector.shape_cast %22 : vector<1x8x32xf32> to vector<1x1x8x32xf32>
    %28 = vector.broadcast %26 : vector<1x8x1x32xf32> to vector<1x8x8x32xf32>
    %29 = vector.broadcast %27 : vector<1x1x8x32xf32> to vector<1x8x8x32xf32>
    %30 = arith.addf %28, %29 : vector<1x8x8x32xf32>
    %31 = math.tanh %30 : vector<1x8x8x32xf32>
    %32 = vector.shape_cast %24 : vector<1x32xf32> to vector<1x1x1x32xf32>
    %33 = vector.broadcast %32 : vector<1x1x1x32xf32> to vector<1x8x8x32xf32>
    %34 = arith.mulf %31, %33 : vector<1x8x8x32xf32>
    %cst_25 = arith.constant dense<0.000000e+00> : vector<1x8x8xf32>
    %35 = vector.multi_reduction <add>, %34, %cst_25 [3] : vector<1x8x8x32xf32> to vector<1x8x8xf32>
    %36 = vector.broadcast %25 : f32 to vector<1x8x8xf32>
    %37 = arith.addf %35, %36 : vector<1x8x8xf32>
    %c0_26 = arith.constant 0 : index
    %c0_27 = arith.constant 0 : index
    %c0_28 = arith.constant 0 : index
    %38 = vector.load %arg14[%c0_26, %c0_27, %c0_28] : memref<1x8x8xf32, #tpu.memory_space<vmem>>, vector<1x8x8xf32>
    tpu.vector_store %arg14[%c0_26, %c0_27, %c0_28], %37 {strides = array<i32>} : memref<1x8x8xf32, #tpu.memory_space<vmem>>, vector<1x8x8xf32>,
    %c0_29 = arith.constant 0 : index
    %c0_30 = arith.constant 0 : index
    %c0_31 = arith.constant 0 : index
    %39 = vector.load %arg14[%c0_29, %c0_30, %c0_31] : memref<1x8x8xf32, #tpu.memory_space<vmem>>, vector<1x8x8xf32>
    %cst_32 = arith.constant dense<0xFF800000> : vector<1x8xf32>
    %40 = vector.multi_reduction <maximumf>, %39, %cst_32 [2] : vector<1x8x8xf32> to vector<1x8xf32>
    %41 = vector.shape_cast %40 : vector<1x8xf32> to vector<1x8x1xf32>
    %42 = vector.broadcast %41 : vector<1x8x1xf32> to vector<1x8x8xf32>
    %43 = arith.subf %39, %42 : vector<1x8x8xf32>
    %44 = math.exp %43 : vector<1x8x8xf32>
    %cst_33 = arith.constant dense<0.000000e+00> : vector<1x8xf32>
    %45 = vector.multi_reduction <add>, %44, %cst_33 [2] : vector<1x8x8xf32> to vector<1x8xf32>
    %46 = vector.shape_cast %45 : vector<1x8xf32> to vector<1x8x1xf32>
    %47 = tpu.reciprocal %46 {approx = true} : vector<1x8x1xf32> -> vector<1x8x1xf32>
    %48 = vector.broadcast %47 : vector<1x8x1xf32> to vector<1x8x8xf32>
    %49 = arith.mulf %44, %48 : vector<1x8x8xf32>
    "tpu.trace_start"() <{level = 10 : i32, message = "bqk,bkd->bqd"}> : () -> ()
    %cst_34 = arith.constant dense<0.000000e+00> : vector<1x8x32xf32>
    %50 = tpu.matmul %49, %23, %cst_34 {dimension_numbers = #tpu.dot_dimension_numbers<[2], [1], [1], [2], [0, 0, 0, 1, 1, 2], [0], [0]>} : vector<1x8x8xf32>, vector<1x8x32xf32>, vector<1x8x32xf32> -> vector<1x8x32xf32>
    "tpu.trace_stop"() : () -> ()
    %c0_35 = arith.constant 0 : index
    %c0_36 = arith.constant 0 : index
    %c0_37 = arith.constant 0 : index
    %51 = vector.load %arg12[%c0_35, %c0_36, %c0_37] : memref<1x8x32xf32, #tpu.memory_space<vmem>>, vector<1x8x32xf32>
    tpu.vector_store %arg12[%c0_35, %c0_36, %c0_37], %50 {strides = array<i32>} : memref<1x8x32xf32, #tpu.memory_space<vmem>>, vector<1x8x32xf32>,
    %c0_38 = arith.constant 0 : index
    %c0_39 = arith.constant 0 : index
    %c0_40 = arith.constant 0 : index
    %52 = vector.load %arg13[%c0_38, %c0_39, %c0_40] : memref<1x8x8xf32, #tpu.memory_space<vmem>>, vector<1x8x8xf32>
    tpu.vector_store %arg13[%c0_38, %c0_39, %c0_40], %49 {strides = array<i32>} : memref<1x8x8xf32, #tpu.memory_space<vmem>>, vector<1x8x8xf32>,
    return
  }
  func.func @transform_0(%arg0: i32) -> (i32, i32, i32) {
    %c0_i32 = arith.constant 0 : i32
    %c0_i32_0 = arith.constant 0 : i32
    %c0_i32_1 = arith.constant 0 : i32
    return %arg0, %c0_i32, %c0_i32_0 : i32, i32, i32
  }
  func.func @transform_1(%arg0: i32) -> (i32, i32, i32) {
    %c0_i32 = arith.constant 0 : i32
    %c0_i32_0 = arith.constant 0 : i32
    %c0_i32_1 = arith.constant 0 : i32
    return %arg0, %c0_i32, %c0_i32_0 : i32, i32, i32
  }
  func.func @transform_2(%arg0: i32) -> (i32, i32, i32) {
    %c0_i32 = arith.constant 0 : i32
    %c0_i32_0 = arith.constant 0 : i32
    %c0_i32_1 = arith.constant 0 : i32
    return %arg0, %c0_i32, %c0_i32_0 : i32, i32, i32
  }
  func.func @transform_3(%arg0: i32) -> (i32, i32) {
    %c0_i32 = arith.constant 0 : i32
    %c0_i32_0 = arith.constant 0 : i32
    %c0_i32_1 = arith.constant 0 : i32
    return %c0_i32, %c0_i32_0 : i32, i32
  }
  func.func @transform_4(%arg0: i32) -> (i32, i32) {
    %c0_i32 = arith.constant 0 : i32
    %c0_i32_0 = arith.constant 0 : i32
    %c0_i32_1 = arith.constant 0 : i32
    return %c0_i32, %c0_i32_0 : i32, i32
  }
  func.func @transform_5(%arg0: i32) -> (i32, i32) {
    %c0_i32 = arith.constant 0 : i32
    %c0_i32_0 = arith.constant 0 : i32
    %c0_i32_1 = arith.constant 0 : i32
    return %c0_i32, %c0_i32_0 : i32, i32
  }
  func.func @transform_6(%arg0: i32) -> (i32, i32) {
    %c0_i32 = arith.constant 0 : i32
    %c0_i32_0 = arith.constant 0 : i32
    %c0_i32_1 = arith.constant 0 : i32
    return %c0_i32, %c0_i32_0 : i32, i32
  }
  func.func @transform_7(%arg0: i32) -> (i32, i32) {
    %c0_i32 = arith.constant 0 : i32
    %c0_i32_0 = arith.constant 0 : i32
    %c0_i32_1 = arith.constant 0 : i32
    return %c0_i32, %c0_i32_0 : i32, i32
  }
  func.func @transform_8(%arg0: i32) -> (i32, i32) {
    %c0_i32 = arith.constant 0 : i32
    %c0_i32_0 = arith.constant 0 : i32
    %c0_i32_1 = arith.constant 0 : i32
    return %c0_i32, %c0_i32_0 : i32, i32
  }
  func.func @transform_9(%arg0: i32) -> (i32, i32) {
    %c0_i32 = arith.constant 0 : i32
    %c0_i32_0 = arith.constant 0 : i32
    %c0_i32_1 = arith.constant 0 : i32
    return %c0_i32, %c0_i32_0 : i32, i32
  }
  func.func @transform_10(%arg0: i32) -> i32 {
    %c0_i32 = arith.constant 0 : i32
    %c0_i32_0 = arith.constant 0 : i32
    return %c0_i32 : i32
  }
  func.func @transform_11(%arg0: i32) -> (i32, i32, i32) {
    %c0_i32 = arith.constant 0 : i32
    %c0_i32_0 = arith.constant 0 : i32
    %c0_i32_1 = arith.constant 0 : i32
    return %arg0, %c0_i32, %c0_i32_0 : i32, i32, i32
  }
  func.func @transform_12(%arg0: i32) -> (i32, i32, i32) {
    %c0_i32 = arith.constant 0 : i32
    %c0_i32_0 = arith.constant 0 : i32
    %c0_i32_1 = arith.constant 0 : i32
    return %arg0, %c0_i32, %c0_i32_0 : i32, i32, i32
  }
}

</mosaic_0001>

<bundles_post_ra>
// kernel: tpu_custom_call.1
= control target key start
LH: loop header
LB: loop body
LE: loop exit
PB: predicated region body
PF: predicated region fallthrough
CT: control target
= control target key end

     0   :  { %s2331_s0 = inlined_call_operand.hbm [shape: f32[2,8,32], index: 0, kind: input, shape index: {}]   ;;  %s2332_s1 = inlined_call_operand.hbm [shape: f32[2,8,32], index: 1, kind: input, shape index: {}]   ;;  %s2333_s2 = inlined_call_operand.hbm [shape: f32[2,8,32], index: 2, kind: input, shape index: {}]   ;;  %s2334_s3 = inlined_call_operand.hbm [shape: f32[32,32], index: 3, kind: input, shape index: {}]   ;;  %s2335_s4 = inlined_call_operand.hbm [shape: f32[32,32], index: 4, kind: input, shape index: {}]   ;;  %s2336_s5 = inlined_call_operand.hbm [shape: f32[32,32], index: 5, kind: input, shape index: {}]   ;;  %s2337_s6 = inlined_call_operand.vmem [shape: f32[1,32], index: 6, kind: input, shape index: {}]   ;;  %s2338_s7 = inlined_call_operand.vmem [shape: f32[1,32], index: 7, kind: input, shape index: {}]   ;;  %s2339_s8 = inlined_call_operand.vmem [shape: f32[1,32], index: 8, kind: input, shape index: {}]   ;;  %s2340_s9 = inlined_call_operand.vmem [shape: f32[1,32], index: 9, kind: input, shape index: {}]   ;;  %s2341_s10 = inlined_call_operand.<no memory space> [shape: f32[1], index: 10, kind: input, shape index: {}]   ;;  %s2342_s11 = inlined_call_operand.hbm [shape: f32[2,8,32], index: 11, kind: output, shape index: {0}]   ;;  %s2343_s12 = inlined_call_operand.hbm [shape: f32[2,8,8], index: 12, kind: output, shape index: {1}]  }
   0x1   :  { %2370 = sst [smem:[#allocation30_spill]] %s2332_s1 }
   0x2   :  { %2371 = sst [smem:[#allocation31_spill]] %s2334_s3 }
   0x3   :  { %2372 = sst [smem:[#allocation32_spill]] %s2339_s8 }
   0x4   :  { %2373 = sst [smem:[#allocation33_spill]] %s2340_s9 }
   0x5   :  { %2374 = sst [smem:[#allocation34_spill]] %s2342_s11 }
   0x6   :  { %2375 = sst [smem:[#allocation35_spill]] %s2343_s12 }
   0x7   :  { %18 = sst [smem:[#allocation3]] %s2341_s10 }
   0x8   :  { %19 = vsyncpa [#allocation5], 0 }
   0x9   :  { %21 = vsyncpa [#allocation5 + $0x1], 0 }
   0xa   :  { %22 = vsyncpa [#allocation8], 0 }
   0xb   :  { %24 = vsyncpa [#allocation8 + $0x1], 0 }
   0xc   :  { %25 = vsyncpa [#allocation11], 0 }
   0xd   :  { %26 = vsyncpa [#allocation14], 0 }
   0xe   :  { %27 = vsyncpa [#allocation6], 0 }
   0xf   :  { %29 = vsyncpa [#allocation6 + $0x1], 0 }
  0x10   :  { %30 = vsyncpa [#allocation17], 0 }
  0x11   :  { %32 = vsyncpa [#allocation17 + $0x1], 0  ;;  %s1913_s23 = smov 0   ;;  %s1915_s24 = smov 0  }
  0x12   :  { %s1917_s25 = smov 0   ;;  %s1919_s26 = smov 0  }
  0x13 LB: > { %2376 = sst [smem:[#allocation24_spill]] %s1817_s23  ;;  %s1934_s10 = sadd.s32 4294967295, %s1829_s26   ;;  %s1829_s26 = sphi %s1919_s26, %s2418_s26   ;;  %s1825_s25 = sphi %s1917_s25, %s2422_s25   ;;  %s1821_s24 = sphi %s1915_s24, %s2421_s24   ;;  %s1817_s23 = sphi %s1913_s23, %s2420_s23  }
  0x14   : > { %2377 = sst [smem:[#allocation25_spill]] %s1829_s26  ;;  %s1319_s27 = sadd.s32 4294967294, %s1829_s26  }
  0x15   : > { %p58_p0 = scmp.ne.s32.totalorder %s1821_s24, %s1817_s23  ;;  %p2346_p1 = scmp.eq.s32.totalorder %s1934_s10, 0 }
  0x16   : > { %p308_p3 = scmp.eq.s32.totalorder %s1319_s27, 1  ;;  %p1320_p5 = scmp.ge.s32.totalorder %s1829_s26, 1 }
  0x17   : > { %p1943_p4 = por %p2346_p1, %p58_p0  ;;  %p341_p7 = scmp.lt.s32.totalorder %s1829_s26, 3 }
  0x18   : > { %p1948_p6 = por %p308_p3, %p58_p0  ;;  %s1831_s13 = smov [#allocation10]  }
  0x19   : > { %s2378_s28 = scalar_select %p1943_p4, 1, 0 }
  0x1a   : > { %s2379_s29 = scalar_select %p1948_p6, 1, 0 }
  0x1b   : > { %p1953_p8 = pnand %p1320_p5, %p341_p7  ;;  %s353_s14 = sshll.u32 %s1831_s13, 4  ;;  %s1957_s14 = int_to_ptr.vmem [resolvable:$true] %s353_s14 }
  0x1c   : > { %2380 = sst [smem:[#allocation26_spill]] %s2379_s29  ;;  %s1969_s16 = sadd.s32 1, %s1829_s26  }
  0x1d   : > { %s2381_s30 = scalar_select %p1953_p8, 1, 0 }
  0x1e   : > { %p1449_p9 = pneg %p1953_p8  ;;  %2383 = sst [smem:[#allocation27_spill]] %s1969_s16 }
  0x1f   : > { %s45_s17 = sadd.s32 1, %s1825_s25  ;;  %s42_s18 = ssub.s32 %s1829_s26, %s1969_s16 }
  0x20   : > { %p1964_p11 = pnand %p1449_p9, %p2346_p1  ;;  %s2384_s3 = sld [smem:[#allocation31_spill]] }
  0x22   : > { %s2382_s15 = scalar_select %p1964_p11, 1, 0 }
  0x23   : > { %p1982_p13 = pneg %p1964_p11 }
  0x25   : > { %s2385_s13 = scalar_select %p1982_p13, 1, 0 }
  0x26   : > { %s1545_s21 = scalar_lea.hbm %s2384_s3, 512 }
  0x27   : > { %p1546_p12 = scmp.ne.s32.totalorder %s2384_s3, %s1545_s21  ;;  %p1552_p5 = scmp.lt.u32.totalorder %s1545_s21, %s2384_s3 }
  0x29   : > { %p1548_p0 = pnand %p1982_p13, %p1546_p12 }
  0x2b   : > { %p1549_p3 = pneg %p1548_p0 }
  0x2d   : > { %p1554_p7 = pnand %p1552_p5, %p1549_p3 }
  0x2f   : > { %1557 = shalt.err (!%p1554_p7)
}
  0x30   : > { %s1558_s19 = scalar_lea.vmem %s1957_s14, 512  ;;  %p1566_p2 = scmp.lt.s32.totalorder %s1957_s14, %s1957_s14 }
  0x31   : > { %p1559_p9 = scmp.ne.s32.totalorder %s1957_s14, %s1558_s19  ;;  %p1567_p6 = scmp.lt.s32.totalorder %s1558_s19, %s1558_s19 }
  0x33   : > { %p1561_p10 = pnand %p1559_p9, %p1982_p13  ;;  %p1568_p12 = por %p1567_p6, %p1566_p2 }
  0x35   : > { %p1562_p1 = pneg %p1561_p10 }
  0x37   : > { %p1569_p0 = pnand %p1568_p12, %p1562_p1 }
  0x39   : > { %1572 = shalt.err (!%p1569_p0)
}
  0x3a   : > { %s2350_s20 = smov 128   ;;  %s2352_s23 = smov 8  }
  0x3b   : > { %1452 = dma.hbm_to_vmem [thread:$0]  (!%p1964_p11), %s2384_s3, 512, %s1957_s14, [#allocation11], %s2350_s20, %s2350_s20, %s2352_s23  }
  0x3c   : > { %p43_p1 = scmp.eq.s32.totalorder %s42_s18, 0  ;;  %p52_p2 = scmp.ne.s32.totalorder %s1825_s25, %s1821_s24 }
  0x3d   : > { %p53_p6 = scmp.eq.s32.totalorder %s1829_s26, 0  ;;  %p1479_p10 = scmp.lt.s32.totalorder %s1829_s26, 2 }
  0x3e   : > { %s2011_s22 = scalar_select %p43_p1, %s1825_s25, %s45_s17  }
  0x3f   : > { %p54_p3 = por %p53_p6, %p52_p2  ;;  %p2387_p5 = scmp.eq.s32.totalorder %s1934_s10, 1 }
  0x40   : > { %2386 = sst [smem:[#allocation28_spill]] %s2011_s22  ;;  %s2354_s19 = sand.u32 1, %s1825_s25  }
  0x41   : > { %p2015_p7 = por %p2387_p5, %p52_p2  ;;  %s2021_s16 = sshll.u32 %s1829_s26, 7 }
  0x42   : > { %s2025_s11 = sshll.u32 %s2354_s19, 3  ;;  %p2027_p9 = pnand %p1479_p10, %p54_p3 }
  0x43   : > { %s2388_s27 = scalar_select %p2015_p7, 1, 0 }
  0x44   : > { %s2390_s14 = scalar_select %p2027_p9, 1, 0 }
  0x45   : > { %2389 = sst [smem:[#allocation29_spill]] %s2388_s27  ;;  %s426_s17 = sand.u32 1, %s1829_s26  }
  0x46   : > { %s2391_s1 = sld [smem:[#allocation30_spill]]  ;;  %s430_s20 = scalar_lea.vmem [#allocation7], %s2025_s11 }
  0x47   : > { %s437_s23 = sshll.u32 %s430_s20, 4  ;;  %s2041_s19 = scalar_lea.sflag [#allocation8], %s426_s17  ;;  %s2039_s23 = int_to_ptr.vmem [resolvable:$true] %s437_s23 }
  0x48   : > { %p2047_p0 = pneg %p2027_p9 }
  0x4a   : > { %s2392_s22 = scalar_select %p2047_p0, 1, 0 }
  0x4c   : > { %s2036_s21 = scalar_lea.hbm %s2391_s1, %s2021_s16  ;;  %s1578_s26 = scalar_lea.hbm %s2391_s1, 256 }
  0x4d   : > { %s1573_s3 = scalar_lea.hbm %s2036_s21, 128  ;;  %p1579_p6 = scmp.lt.u32.totalorder %s2036_s21, %s2391_s1 }
  0x4e   : > { %p1574_p12 = scmp.ne.s32.totalorder %s2036_s21, %s1573_s3  ;;  %p1580_p10 = scmp.lt.u32.totalorder %s1578_s26, %s1573_s3 }
  0x4f   : > { %p1582_p5 = scmp.lt.u32.totalorder %s1573_s3, %s2036_s21 }
  0x50   : > { %p1576_p1 = pnand %p2047_p0, %p1574_p12  ;;  %p1581_p3 = por %p1580_p10, %p1579_p6 }
  0x52   : > { %p1577_p2 = pneg %p1576_p1  ;;  %p1583_p7 = por %p1582_p5, %p1581_p3 }
  0x54   : > { %p1584_p4 = pnand %p1583_p7, %p1577_p2 }
  0x56   : > { %1587 = shalt.err (!%p1584_p4)
}
  0x57   : > { %s1588_s17 = scalar_lea.vmem %s2039_s23, 128  ;;  %s1834_s18 = smov [#allocation7]  }
  0x58   : > { %p1589_p12 = scmp.ne.s32.totalorder %s2039_s23, %s1588_s17  ;;  %s1593_s29 = sshll.u32 %s1834_s18, 4  ;;  %s1594_s29 = int_to_ptr.vmem [resolvable:$false] %s1593_s29 }
  0x59   : > { %s1595_s12 = scalar_lea.vmem %s1594_s29, 256  ;;  %p1596_p11 = scmp.lt.s32.totalorder %s2039_s23, %s1594_s29 }
  0x5a   : > { %p1591_p1 = pnand %p1589_p12, %p2047_p0  ;;  %p1597_p13 = scmp.lt.s32.totalorder %s1595_s12, %s1588_s17 }
  0x5c   : > { %p1592_p8 = pneg %p1591_p1  ;;  %p1598_p6 = por %p1597_p13, %p1596_p11 }
  0x5e   : > { %p1599_p10 = pnand %p1598_p6, %p1592_p8 }
  0x60   : > { %1602 = shalt.err (!%p1599_p10)
}
  0x61   : > { %1465 = dma.hbm_to_vmem [thread:$0]  (!%p2027_p9), %s2036_s21, 128, %s2039_s23, %s2041_s19  }
  0x62   : > { %s1835_s3 = smov [#allocation12]   ;;  %s1836_s20 = smov [#allocation13]  }
  0x63   : > { %s366_s26 = sshll.u32 %s1835_s3, 4  ;;  %s379_s1 = sshll.u32 %s1836_s20, 4  ;;  %s367_s26 = int_to_ptr.vmem [resolvable:$true] %s366_s26  ;;  %s380_s1 = int_to_ptr.vmem [resolvable:$true] %s379_s1 }
  0x64   : > { %s1603_s29 = scalar_lea.hbm %s2335_s4, 512  ;;  %p2393_p8 = scmp.ne.s32.totalorder %s2385_s13, 0 }
  0x65   : > { %p1604_p4 = scmp.ne.s32.totalorder %s2335_s4, %s1603_s29  ;;  %p1610_p7 = scmp.lt.u32.totalorder %s1603_s29, %s2335_s4 }
  0x67   : > { %p1606_p11 = pnand %p1604_p4, %p2393_p8 }
  0x69   : > { %p1607_p13 = pneg %p1606_p11 }
  0x6b   : > { %p1612_p2 = pnand %p1610_p7, %p1607_p13 }
  0x6d   : > { %1615 = shalt.err (!%p1612_p2)
}
  0x6e   : > { %s1616_s23 = scalar_lea.vmem %s367_s26, 512  ;;  %p1624_p1 = scmp.lt.s32.totalorder %s367_s26, %s367_s26 }
  0x6f   : > { %p1617_p3 = scmp.ne.s32.totalorder %s367_s26, %s1616_s23  ;;  %p1625_p6 = scmp.lt.s32.totalorder %s1616_s23, %s1616_s23 }
  0x71   : > { %p1619_p5 = pnand %p1617_p3, %p2393_p8  ;;  %p1626_p10 = por %p1625_p6, %p1624_p1 }
  0x73   : > { %p1620_p12 = pneg %p1619_p5 }
  0x75   : > { %p1627_p9 = pnand %p1626_p10, %p1620_p12 }
  0x77   : > { %1630 = shalt.err (!%p1627_p9)
}
  0x78   : > { %p2394_p4 = scmp.ne.s32.totalorder %s2382_s15, 0  ;;  %s2395_s27 = smov 8  }
  0x79   : > { %s2396_s21 = smov 128   ;;  %s1631_s18 = scalar_lea.hbm %s2336_s5, 512 }
  0x7a   : > { %1455 = dma.hbm_to_vmem [thread:$0]  (!%p2394_p4), %s2335_s4, 512, %s367_s26, [#allocation11], %s2396_s21, %s2396_s21, %s2395_s27  }
  0x7b   : > { %p1632_p11 = scmp.ne.s32.totalorder %s2336_s5, %s1631_s18  ;;  %p1638_p7 = scmp.lt.u32.totalorder %s1631_s18, %s2336_s5 }
  0x7d   : > { %p1634_p9 = pnand %p1632_p11, %p2393_p8 }
  0x7f   : > { %p1635_p13 = pneg %p1634_p9 }
  0x81   : > { %p1640_p2 = pnand %p1638_p7, %p1635_p13 }
  0x83   : > { %1643 = shalt.err (!%p1640_p2)
}
  0x84   : > { %s1644_s8 = scalar_lea.vmem %s380_s1, 512  ;;  %p1652_p1 = scmp.lt.s32.totalorder %s380_s1, %s380_s1 }
  0x85   : > { %p1645_p3 = scmp.ne.s32.totalorder %s380_s1, %s1644_s8  ;;  %p1653_p6 = scmp.lt.s32.totalorder %s1644_s8, %s1644_s8 }
  0x87   : > { %p1647_p5 = pnand %p1645_p3, %p2393_p8  ;;  %p1654_p10 = por %p1653_p6, %p1652_p1 }
  0x89   : > { %p1648_p12 = pneg %p1647_p5 }
  0x8b   : > { %p1655_p0 = pnand %p1654_p10, %p1648_p12 }
  0x8d   : > { %1658 = shalt.err (!%p1655_p0)
}
  0x8e   : > { %1458 = dma.hbm_to_vmem [thread:$0]  (!%p2394_p4), %s2336_s5, 512, %s380_s1, [#allocation14], %s2396_s21, %s2396_s21, %s2395_s27  }
  0x8f   : > { %s2117_s20 = scalar_lea.hbm %s2331_s0, %s2021_s16  ;;  %s412_s15 = scalar_lea.vmem [#allocation4], %s2025_s11 }
  0x90   : > { %s419_s18 = sshll.u32 %s412_s15, 4  ;;  %s2126_s12 = scalar_lea.hbm %s2333_s2, %s2021_s16  ;;  %s2120_s18 = int_to_ptr.vmem [resolvable:$true] %s419_s18 }
  0x91   : > { %s2397_s23 = sand.u32 1, %s1825_s25   ;;  %s1659_s27 = scalar_lea.hbm %s2117_s20, 128 }
  0x92   : > { %s409_s1 = scalar_lea.sflag [#allocation5], %s2397_s23  ;;  %p1660_p0 = scmp.ne.s32.totalorder %s2117_s20, %s1659_s27 }
  0x93   : > { %p2398_p8 = scmp.ne.s32.totalorder %s2392_s22, 0  ;;  %s1664_s26 = scalar_lea.hbm %s2331_s0, 256 }
  0x94   : > { %p1665_p9 = scmp.lt.u32.totalorder %s2117_s20, %s2331_s0  ;;  %p1666_p13 = scmp.lt.u32.totalorder %s1664_s26, %s1659_s27 }
  0x95   : > { %p1662_p4 = pnand %p1660_p0, %p2398_p8  ;;  %p1668_p2 = scmp.lt.u32.totalorder %s1659_s27, %s2117_s20 }
  0x96   : > { %p1667_p7 = por %p1666_p13, %p1665_p9 }
  0x97   : > { %p1663_p11 = pneg %p1662_p4 }
  0x98   : > { %p1669_p3 = por %p1668_p2, %p1667_p7 }
  0x9a   : > { %p1670_p5 = pnand %p1669_p3, %p1663_p11 }
  0x9c   : > { %1673 = shalt.err (!%p1670_p5)
}
  0x9d   : > { %s1674_s16 = scalar_lea.vmem %s2120_s18, 128  ;;  %s1837_s3 = smov [#allocation4]  }
  0x9e   : > { %p1675_p12 = scmp.ne.s32.totalorder %s2120_s18, %s1674_s16  ;;  %s1679_s15 = sshll.u32 %s1837_s3, 4  ;;  %s1680_s15 = int_to_ptr.vmem [resolvable:$false] %s1679_s15 }
  0x9f   : > { %s1681_s29 = scalar_lea.vmem %s1680_s15, 256  ;;  %p1682_p10 = scmp.lt.s32.totalorder %s2120_s18, %s1680_s15 }
  0xa0   : > { %p1677_p1 = pnand %p1675_p12, %p2398_p8  ;;  %p1683_p0 = scmp.lt.s32.totalorder %s1681_s29, %s1674_s16 }
  0xa2   : > { %p1678_p6 = pneg %p1677_p1  ;;  %p1684_p4 = por %p1683_p0, %p1682_p10 }
  0xa4   : > { %p1685_p9 = pnand %p1684_p4, %p1678_p6 }
  0xa6   : > { %1688 = shalt.err (!%p1685_p9)
}
  0xa7   : > { %p2399_p11 = scmp.ne.s32.totalorder %s2390_s14, 0  ;;  %s448_s17 = scalar_lea.vmem [#allocation9], %s2025_s11 }
  0xa8   : > { %s455_s23 = sshll.u32 %s448_s17, 4  ;;  %s1689_s27 = scalar_lea.hbm %s2126_s12, 128  ;;  %s456_s23 = int_to_ptr.vmem [resolvable:$true] %s455_s23 }
  0xa9   : > { %1462 = dma.hbm_to_vmem [thread:$0]  (!%p2399_p11), %s2117_s20, 128, %s2120_s18, %s409_s1  }
  0xaa   : > { %p1690_p13 = scmp.ne.s32.totalorder %s2126_s12, %s1689_s27  ;;  %s1694_s26 = scalar_lea.hbm %s2333_s2, 256 }
  0xab   : > { %p1695_p3 = scmp.lt.u32.totalorder %s2126_s12, %s2333_s2  ;;  %p1696_p5 = scmp.lt.u32.totalorder %s1694_s26, %s1689_s27 }
  0xac   : > { %p1692_p7 = pnand %p1690_p13, %p2398_p8  ;;  %p1698_p1 = scmp.lt.u32.totalorder %s1689_s27, %s2126_s12 }
  0xad   : > { %p1697_p12 = por %p1696_p5, %p1695_p3 }
  0xae   : > { %p1693_p2 = pneg %p1692_p7 }
  0xaf   : > { %p1699_p6 = por %p1698_p1, %p1697_p12 }
  0xb1   : > { %p1700_p10 = pnand %p1699_p6, %p1693_p2 }
  0xb3   : > { %1703 = shalt.err (!%p1700_p10)
}
  0xb4   : > { %s1704_s11 = scalar_lea.vmem %s456_s23, 128  ;;  %s1838_s20 = smov [#allocation9]  }
  0xb5   : > { %p1705_p0 = scmp.ne.s32.totalorder %s456_s23, %s1704_s11  ;;  %s1709_s18 = sshll.u32 %s1838_s20, 4  ;;  %s1710_s18 = int_to_ptr.vmem [resolvable:$false] %s1709_s18 }
  0xb6   : > { %s1711_s1 = scalar_lea.vmem %s1710_s18, 256  ;;  %p1712_p13 = scmp.lt.s32.totalorder %s456_s23, %s1710_s18 }
  0xb7   : > { %p1707_p4 = pnand %p1705_p0, %p2398_p8  ;;  %p1713_p7 = scmp.lt.s32.totalorder %s1711_s1, %s1704_s11 }
  0xb9   : > { %p1708_p9 = pneg %p1707_p4  ;;  %p1714_p11 = por %p1713_p7, %p1712_p13 }
  0xbb   : > { %p1715_p3 = pnand %p1714_p11, %p1708_p9 }
  0xbd   : > { %1718 = shalt.err (!%p1715_p3)
}
  0xbe   : > { %p2400_p5 = scmp.ne.s32.totalorder %s2390_s14, 0  ;;  %p2401_p2 = scmp.ne.s32.totalorder %s2381_s30, 0 }
  0xbf   : > { %s2173_s22 = sand.u32 (!%p2401_p2), 1, %s1821_s24   ;;  %p2402_p8 = scmp.ne.s32.totalorder (!%p2401_p2), %s2378_s28, 0 }
  0xc0   : > { %1468 = dma.hbm_to_vmem [thread:$0]  (!%p2400_p5), %s2126_s12, 128, %s456_s23, %s2041_s19  }
  0xc1   : > { %464 = sbr.rel (%p2401_p2) target bundleno = 1166 (0x48e), region = 64  ;;  %s2176_s16 = sshll.u32 (!%p2401_p2), %s2173_s22, 3 }
  0xc2   : > { %s467_s3 = scalar_lea.sflag (!%p2401_p2), [#allocation5], %s2173_s22  ;;  %s470_s15 = scalar_lea.vmem (!%p2401_p2), [#allocation4], %s2176_s16 }
  0xc8   : > { %1792 = dma.done.wait (%p2402_p8), %s467_s3, 128  }
  0xc9   : > { %1794 = vsyncadd (%p2402_p8), %s467_s3, 4294967168  ;;  %s475_s30 = sand.u32 1, %s1934_s10   ;;  %s479_s14 = scalar_lea.vmem [#allocation7], %s2176_s16 }
  0xca   : > { %s476_s19 = scalar_lea.sflag [#allocation8], %s475_s30 }
  0xcb   : > { %1796 = dma.done.wait (%p2402_p8), %s476_s19, 256  }
  0xcc   : > { %1798 = vsyncadd (%p2402_p8), %s476_s19, 4294967040  ;;  %s488_s12 = scalar_lea.vmem [#allocation9], %s2176_s16  ;;  %p2403_p11 = scmp.eq.s32.totalorder %s1934_s10, 0 }
  0xce   : > { %1800 = dma.done.wait (%p2403_p11), [#allocation11], 1024   ;;  %p2404_p12 = pmov %p2403_p11 }
  0xcf   : > { %p2405_p1 = pmov %p2403_p11 }
  0xd0   : > { %1802 = vsyncadd (%p2404_p12), [#allocation11], 4294966272 }
  0xd1   : > { %1804 = dma.done.wait (%p2405_p1), [#allocation14], 512   ;;  %p2406_p6 = pmov %p2405_p1 }
  0xd2   : > { %v1839_v0 = vmov 0.0|0.0   ;;  %vm1840_vm0 = vmmov 0   ;;  %v1841_v1 = vmov 0.0   ;;  %v559_v2 = vld [vmem:[#allocation10] sm:$0xff]  ;;  %v560_v3 = vld [vmem:[#allocation10 + $0x8] sm:$0xff]  ;;  %v561_v4 = vld [vmem:[#allocation10 + $0x10] sm:$0xff]  ;;  %v819_v16 = vlaneseq }
  0xd3   : > { %1806 = vsyncadd (%p2406_p6), [#allocation14], 4294966784  ;;  %1409 = vmatprep.subr.bf16.mxu0 %v1839_v0  ;;  %1415 = vmatprep.subr.bf16.mxu1 %v1839_v0  ;;  %v1410_v5 = vpack.c.bf16 %v560_v3, %v559_v2  ;;  %v562_v6 = vld [vmem:[#allocation10 + $0x18] sm:$0xff]  ;;  %v644_v7 = vld [vmem:[#allocation12] sm:$0xff]  ;;  %vm570_vm1 = vcmask 261120   ;;  %s2407_s8 = sld [smem:[#allocation33_spill]] }
  0xd4   : > { %1379 = vmatprep.mubr.msk.f32.mxu0 %vm1840_vm0, %v1841_v1  ;;  %1390 = vmatprep.mubr.msk.f32.mxu1 %vm1840_vm0, %v1841_v1  ;;  %v645_v8 = vld [vmem:[#allocation12 + $0x8] sm:$0xff]  ;;  %v646_v10 = vld [vmem:[#allocation12 + $0x10] sm:$0xff]  ;;  %v647_v11 = vld [vmem:[#allocation12 + $0x18] sm:$0xff]  ;;  %v1413_v12 = vpack.c.bf16 %v562_v6, %v561_v4  ;;  %v820_v17 = vshrl.u32 %v819_v16, 7  ;;  %v976_v18 = vand.u32 127, %v819_v16  ;;  %s813_s26 = sld [smem:[#allocation3]] }
  0xd5   : > { %v1416_v9 = vpack.c.bf16 %v645_v8, %v644_v7  ;;  %1411 = vmatpush3.bf16.msra.mxu0 %v1410_v5  ;;  %v1419_v13 = vpack.c.bf16 %v647_v11, %v646_v10  ;;  %v556_v14 = vld [vmem:[%s470_s15] sm:$0xff]  ;;  %v557_v15 = vld [vmem:[%s479_s14] sm:$0xff]  ;;  %v1842_v20 = vmov 1966171168   ;;  %vm1009_vm2 = vcmask 1041409   ;;  %s2408_s11 = sld [smem:[#allocation32_spill]] }
  0xd6   : > { %1412 = vmatprep.subr.bf16.mxu0 %v1839_v0  ;;  %v2214_v19 = vsub.s32 %v976_v18, %v820_v17  ;;  %v817_v21 = vunpack.c.l.s4 %v1842_v20  ;;  %v1340_v23 = vld [vmem:[%s2337_s6] ss:$0 sm:$0xff]  ;;  %v866_v33 = vsub.s32 0, %v820_v17  ;;  %vm1011_vm3 = vcmask 1042434   ;;  %s2409_s20 = sld [smem:[#allocation29_spill]]  ;;  %s555_s18 = scalar_lea.vmem [#allocation16], %s2176_s16 }
  0xd7   : > { %1417 = vmatpush3.bf16.msra.mxu1 %v1416_v9  ;;  %v1342_v32 = vld [vmem:[%s2338_s7] ss:$0 sm:$0xff]  ;;  %vm1013_vm4 = vcmask 1043459   ;;  %vm1015_vm5 = vcmask 1044484   ;;  %vm1017_vm6 = vcmask 1045509   ;;  %vm1019_vm7 = vcmask 1046534  }
  0xd8   : > { %1418 = vmatprep.subr.bf16.mxu1 %v1839_v0  ;;  %v818_v22 = vunpack.c.0.s8 %v817_v21  ;;  %vm1021_vm8 = vcmask 1047559   ;;  %vm1024_vm9 = vcmask 64512   ;;  %s1350_s1 = sshll.u32 %s1934_s10, 7  ;;  %s2410_s30 = sld [smem:[#allocation35_spill]] }
  0xd9   : > { %1414 = vmatpush3.bf16.msra.mxu0 %v1413_v12  ;;  %v1346_v62 = vld [vmem:[%s2407_s8] ss:$0 sm:$0xff]  ;;  %s1145_s14 = sshll.u32 %s555_s18, 4  ;;  %s1843_s29 = smov [#allocation16]   ;;  %s1146_s14 = int_to_ptr.vmem [resolvable:$true] %s1145_s14 }
  0xda   : > { %1421 = vmatprep.subr.bf16.mxu0 %v1839_v0  ;;  %v821_v24 = vsub.s32 %v818_v22, %v820_v17  ;;  %s1719_s28 = scalar_lea.vmem %s1146_s14, 128  ;;  %s1723_s17 = sshll.u32 %s1843_s29, 4  ;;  %s1724_s17 = int_to_ptr.vmem [resolvable:$false] %s1723_s17 }
  0xdb   : > { %1420 = vmatpush3.bf16.msra.mxu1 %v1419_v13  ;;  %p1720_p10 = scmp.ne.s32.totalorder %s1146_s14, %s1719_s28  ;;  %s1725_s23 = scalar_lea.vmem %s1724_s17, 256 }
  0xdc   : > { %1404 = vmatprep.subr.mxu1 %v1841_v1  ;;  %1380 = vmatmul.mubr.msk.f32.vlgmr.msra.gmra.mrb[0].mxu0 %vm570_vm1, %v556_v14  ;;  %p2411_p0 = scmp.ne.s32.totalorder %s2409_s20, 0  ;;  %p1726_p13 = scmp.lt.s32.totalorder %s1146_s14, %s1724_s17 }
  0xdd   : > { %1401 = vmatprep.mubr.msk.f32.mxu0 %vm1840_vm0, %v1841_v1  ;;  %p1727_p7 = scmp.lt.s32.totalorder %s1725_s23, %s1719_s28 }
  0xde   : > { %1391 = vmatmul.mubr.msk.f32.vlgmr.msra.gmra.mrb[0].mxu1 %vm570_vm1, %v557_v15  ;;  %s2260_s19 = scalar_lea.hbm %s2410_s30, %s1350_s1  ;;  %p1721_p4 = pnand %p1720_p10, %p2411_p0 }
  0xdf   : > { %1406 = vmatprep.mubr.msk.f32.mxu1 %vm1840_vm0, %v1841_v1  ;;  %p1728_p3 = por %p1727_p7, %p1726_p13 }
  0xe0   : > { %p1722_p9 = pneg %p1721_p4 }
  0xe2   : > { %p1729_p5 = pnand %p1728_p3, %p1722_p9 }
 0x1af   : > { %v640_v25 = vpop.f32.mrb[0].mxu0 }
 0x1b0   : > { %v641_v26 = vadd.f32 %v1340_v23, %v640_v25  ;;  %v1381_v27 = vpop.f32.mrb[1].mxu0  ;;  %v728_v25 = vld [vmem:[#allocation13] sm:$0xff] }
 0x1b1   : > { %v724_v28 = vpop.f32.mrb[0].mxu1  ;;  %v730_v27 = vld [vmem:[#allocation13 + $0x10] sm:$0xff] }
 0x1b2   : > { %v1392_v29 = vpop.f32.mrb[1].mxu1  ;;  %v815_v30 = vcombine.high %v641_v26, %v641_v26  ;;  %v822_v31 = vrot.slane %v641_v26, %v821_v24  ;;  %v725_v37 = vadd.f32 %v1342_v32, %v724_v28  ;;  %v729_v26 = vld [vmem:[#allocation13 + $0x8] sm:$0xff]  ;;  %v958_v32 = vstv %s813_s26 }
 0x1b3   : > { %v1422_v28 = vpack.c.bf16 %v729_v26, %v728_v25  ;;  %v731_v29 = vld [vmem:[#allocation13 + $0x18] sm:$0xff] }
 0x1b4   : > { %v829_v34 = vrot.slane %v815_v30, %v821_v24  ;;  %v830_v35 = vcombine.high %v822_v31, %v822_v31  ;;  %v838_v36 = vrot.slane %v822_v31, %v821_v24  ;;  %v1425_v30 = vpack.c.bf16 %v731_v29, %v730_v27  ;;  %v558_v31 = vld [vmem:[%s488_s12] sm:$0xff]  ;;  %s1119_s12 = scalar_lea.sflag [#allocation17], %s2173_s22 }
 0x1b5   : > { %1423 = vmatpush3.bf16.msra.mxu0 %v1422_v28 }
 0x1b6   : > { %v831_v38 = vcombine.high %v829_v34, %v829_v34  ;;  %v845_v39 = vrot.slane %v829_v34, %v821_v24  ;;  %v852_v40 = vrot.slane %v830_v35, %v821_v24  ;;  %v860_v41 = vcombine.high %v838_v36, %v838_v36  ;;  %1424 = vmatprep.subr.bf16.mxu0 %v1839_v0 }
 0x1b7   : > { %v867_v42 = vrot.slane %v838_v36, %v866_v33 }
 0x1b8   : > { %v859_v43 = vrot.slane %v831_v38, %v821_v24  ;;  %v861_v44 = vcombine.high %v845_v39, %v845_v39  ;;  %v862_v45 = vcombine.high %v852_v40, %v852_v40  ;;  %v871_v46 = vrot.slane %v852_v40, %v866_v33 }
 0x1b9   : > { %v875_v47 = vrot.slane %v860_v41, %v866_v33  ;;  %v883_v48 = vrot.slane %v845_v39, %v866_v33  ;;  %v904_v49 = vadd.f32 %v867_v42, %v725_v37  ;;  %1426 = vmatpush3.bf16.msra.mxu0 %v1425_v30 }
 0x1ba   : > { %v863_v50 = vcombine.high %v859_v43, %v859_v43  ;;  %v879_v51 = vrot.slane %v862_v45, %v866_v33  ;;  %v887_v52 = vrot.slane %v859_v43, %v866_v33  ;;  %v891_v53 = vrot.slane %v861_v44, %v866_v33 }
 0x1bb   : > { %1525 = vtanh.f32 %v904_v49  ;;  %v906_v54 = vadd.f32 %v875_v47, %v725_v37  ;;  %v905_v55 = vadd.f32 %v871_v46, %v725_v37  ;;  %v908_v56 = vadd.f32 %v883_v48, %v725_v37 }
 0x1bc   : > { %v895_v57 = vrot.slane %v863_v50, %v866_v33  ;;  %v907_v58 = vadd.f32 %v879_v51, %v725_v37  ;;  %v909_v59 = vadd.f32 %v887_v52, %v725_v37  ;;  %v910_v60 = vadd.f32 %v891_v53, %v725_v37  ;;  %1402 = vmatmul.mubr.msk.f32.vlgmr.msra.gmra.mrb[2].mxu0 %vm570_vm1, %v558_v31 }
 0x1bd   : > { %1527 = vtanh.f32 %v906_v54 }
 0x1be   : > { %1529 = vtanh.f32 %v905_v55  ;;  %v911_v61 = vadd.f32 %v895_v57, %v725_v37 }
 0x1bf   : > { %1531 = vtanh.f32 %v907_v58 }
 0x1c0   : > { %1533 = vtanh.f32 %v908_v56 }
 0x1c1   : > { %1535 = vtanh.f32 %v909_v59 }
 0x1c2   : > { %1537 = vtanh.f32 %v910_v60 }
 0x1c3   : > { %1539 = vtanh.f32 %v911_v61 }
 0x1c5   : > { %v1526_v63 = vpop.eup %1525 }
 0x1c6   : > { %v926_v1 = vmul.f32 %v1526_v63, %v1346_v62 }
 0x1c7   : > { %v1528_v2 = vpop.eup %1527 }
 0x1c8   : > { %v1530_v3 = vpop.eup %1529  ;;  %v934_v4 = vsel %vm570_vm1, %v926_v1, 0.0  ;;  %v928_v5 = vmul.f32 %v1528_v2, %v1346_v62 }
 0x1c9   : > { %v1532_v6 = vpop.eup %1531  ;;  %935 = vadd.xlane.f32.xlu0 %v934_v4  ;;  %v927_v7 = vmul.f32 %v1530_v3, %v1346_v62 }
 0x1ca   : > { %v1534_v8 = vpop.eup %1533  ;;  %v940_v9 = vsel %vm570_vm1, %v928_v5, 0.0  ;;  %v929_v10 = vmul.f32 %v1532_v6, %v1346_v62 }
 0x1cb   : > { %v1536_v11 = vpop.eup %1535  ;;  %941 = vadd.xlane.f32.xlu1 %v940_v9  ;;  %v937_v12 = vsel %vm570_vm1, %v927_v7, 0.0  ;;  %v930_v13 = vmul.f32 %v1534_v8, %v1346_v62 }
 0x1cc   : > { %v1538_v14 = vpop.eup %1537  ;;  %v943_v15 = vsel %vm570_vm1, %v929_v10, 0.0  ;;  %v931_v16 = vmul.f32 %v1536_v11, %v1346_v62 }
 0x1cd   : > { %938 = vadd.xlane.f32.xlu0 %v937_v12  ;;  %v1540_v17 = vpop.eup %1539  ;;  %v946_v18 = vsel %vm570_vm1, %v930_v13, 0.0  ;;  %v932_v20 = vmul.f32 %v1538_v14, %v1346_v62 }
 0x1ce   : > { %v949_v21 = vsel %vm570_vm1, %v931_v16, 0.0  ;;  %v933_v22 = vmul.f32 %v1540_v17, %v1346_v62 }
 0x1cf   : > { %944 = vadd.xlane.f32.xlu1 %v943_v15  ;;  %v952_v23 = vsel %vm570_vm1, %v932_v20, 0.0 }
 0x1d0   : > { %v955_v24 = vsel %vm570_vm1, %v933_v22, 0.0 }
 0x1d1   : > { %947 = vadd.xlane.f32.xlu0 %v946_v18 }
 0x1d3   : > { %950 = vadd.xlane.f32.xlu1 %v949_v21 }
 0x1d5   : > { %953 = vadd.xlane.f32.xlu0 %v952_v23 }
 0x1d7   : > { %956 = vadd.xlane.f32.xlu1 %v955_v24 }
 0x256   : > { %v936_v33 = vpop.xlane.xlu0 %935 }
 0x257   : > { %v959_v35 = vadd.f32 %v958_v32, %v936_v33 }
 0x258   : > { %v942_v34 = vpop.xlane.xlu1 %941 }
 0x259   : > { %v961_v36 = vadd.f32 %v958_v32, %v942_v34  ;;  %v980_v40 = vrot.slane %v959_v35, %v2214_v19 }
 0x25a   : > { %v939_v37 = vpop.xlane.xlu0 %938 }
 0x25b   : > { %v960_v38 = vadd.f32 %v958_v32, %v939_v37  ;;  %v988_v42 = vrot.slane %v961_v36, %v2214_v19 }
 0x25c   : > { %v945_v39 = vpop.xlane.xlu1 %944 }
 0x25d   : > { %v984_v41 = vrot.slane %v960_v38, %v2214_v19  ;;  %v962_v0 = vadd.f32 %v958_v32, %v945_v39 }
 0x25e   : > { %v948_v43 = vpop.xlane.xlu0 %947 }
 0x25f   : > { %v1010_v44 = vsel %vm1009_vm2, %v984_v41, %v980_v40  ;;  %v992_v45 = vrot.slane %v962_v0, %v2214_v19  ;;  %v963_v46 = vadd.f32 %v958_v32, %v948_v43 }
 0x260   : > { %v1012_v47 = vsel %vm1011_vm3, %v988_v42, %v1010_v44  ;;  %v951_v48 = vpop.xlane.xlu1 %950 }
 0x261   : > { %v1014_v49 = vsel %vm1013_vm4, %v992_v45, %v1012_v47  ;;  %v996_v50 = vrot.slane %v963_v46, %v2214_v19  ;;  %v964_v51 = vadd.f32 %v958_v32, %v951_v48 }
 0x262   : > { %v954_v52 = vpop.xlane.xlu0 %953 }
 0x263   : > { %v1016_v53 = vsel %vm1015_vm5, %v996_v50, %v1014_v49  ;;  %v1000_v54 = vrot.slane %v964_v51, %v2214_v19  ;;  %v965_v55 = vadd.f32 %v958_v32, %v954_v52 }
 0x264   : > { %v957_v56 = vpop.xlane.xlu1 %956 }
 0x265   : > { %v1018_v57 = vsel %vm1017_vm6, %v1000_v54, %v1016_v53  ;;  %v1004_v58 = vrot.slane %v965_v55, %v2214_v19  ;;  %v966_v59 = vadd.f32 %v958_v32, %v957_v56 }
 0x267   : > { %v1020_v60 = vsel %vm1019_vm7, %v1004_v58, %v1018_v57  ;;  %v1008_v61 = vrot.slane %v966_v59, %v2214_v19  ;;  %v1344_v19 = vld [vmem:[%s2408_s11] ss:$0 sm:$0xff] }
 0x269   : > { %v1022_v62 = vsel %vm1021_vm8, %v1008_v61, %v1020_v60 }
 0x26a   : > { %1025 = vst.msk [vmem:[#allocation2] sm:$0xff] %vm1024_vm9, %v1022_v62 }
 0x271   : > { %v1026_v63 = vld [vmem:[#allocation2] sm:$0xff] }
 0x272   : > { %v1027_v1 = vsel %vm1024_vm9, %v1026_v63, -inf }
 0x273   : > { %1028 = vmax.xlane.f32.xlu0 %v1027_v1 }
 0x28f   : > { %v808_v7 = vpop.f32.mrb[2].mxu0 }
 0x290   : > { %v809_v8 = vadd.f32 %v1344_v19, %v808_v7  ;;  %v1403_v9 = vpop.f32.mrb[3].mxu0 }
 0x292   : > { %1405 = vmatpush3.msra.mxu1 %v809_v8 }
 0x300   : > { %v1029_v2 = vpop.xlane.xlu0 %1028 }
 0x301   : > { %v1030_v3 = vsub.f32 %v1026_v63, %v1029_v2 }
 0x303   : > { %v1031_v4 = vmul.f32 1.442695, %v1030_v3 }
 0x305   : > { %1541 = vpow2.f32 %v1031_v4 }
 0x30f   : > { %v1542_v5 = vpop.eup %1541 }
 0x310   : > { %v1033_v6 = vsel %vm1024_vm9, %v1542_v5, 0.0 }
 0x311   : > { %1034 = vadd.xlane.f32.xlu1 %v1033_v6 }
 0x39e   : > { %v1035_v10 = vpop.xlane.xlu1 %1034 }
 0x39f   : > { %1543 = vrcp.f32 %v1035_v10 }
 0x3a9   : > { %v1544_v11 = vpop.eup %1543 }
 0x3aa   : > { %v1037_v12 = vmul.f32 %v1544_v11, %v1542_v5 }
 0x3ac   : > { %1407 = vmatmul.mubr.msk.f32.vlgmr.msra.gmra.mrb[2].mxu1 %vm1024_vm9, %v1037_v12  ;;  %1112 = vst.msk [vmem:[%s555_s18] sm:$0xff] %vm1024_vm9, %v1037_v12 }
 0x3ad   : > { %1732 = shalt.err (!%p1729_p5)
}
 0x3ae   : > { %s1733_s27 = scalar_lea.hbm %s2260_s19, 128  ;;  %s1737_s26 = scalar_lea.hbm %s2410_s30, 256 }
 0x3af   : > { %p1734_p2 = scmp.ne.s32.totalorder %s2260_s19, %s1733_s27  ;;  %p1738_p12 = scmp.lt.u32.totalorder %s2260_s19, %s2410_s30 }
 0x3b0   : > { %p1739_p1 = scmp.lt.u32.totalorder %s1737_s26, %s1733_s27  ;;  %p1741_p10 = scmp.lt.u32.totalorder %s1733_s27, %s2260_s19 }
 0x3b1   : > { %p1735_p8 = pnand %p1734_p2, %p2411_p0 }
 0x3b2   : > { %p1740_p6 = por %p1739_p1, %p1738_p12 }
 0x3b3   : > { %p1736_p11 = pneg %p1735_p8 }
 0x3b4   : > { %p1742_p4 = por %p1741_p10, %p1740_p6 }
 0x3b6   : > { %p1743_p9 = pnand %p1742_p4, %p1736_p11 }
 0x3b8   : > { %1746 = shalt.err (!%p1743_p9)
}
 0x3b9   : > { %1446 = dma.vmem_to_hbm [thread:$0]  (%p2411_p0), %s1146_s14, 128, %s2260_s19, %s1119_s12  }
 0x3ba   : > { %s548_s11 = scalar_lea.vmem [#allocation15], %s2176_s16  ;;  %s2412_s28 = sld [smem:[#allocation34_spill]] }
 0x3bb   : > { %s1132_s18 = sshll.u32 %s548_s11, 4  ;;  %s1114_s17 = scalar_lea.sflag [#allocation6], %s2173_s22  ;;  %s2288_s18 = int_to_ptr.vmem [resolvable:$true] %s1132_s18 }
 0x3bc   : > { %s1747_s23 = scalar_lea.vmem %s2288_s18, 128  ;;  %s1844_s10 = smov [#allocation15]  }
 0x3bd   : > { %p1748_p13 = scmp.ne.s32.totalorder %s2288_s18, %s1747_s23  ;;  %s1751_s16 = sshll.u32 %s1844_s10, 4  ;;  %s1752_s16 = int_to_ptr.vmem [resolvable:$false] %s1751_s16 }
 0x3be   : > { %p1754_p5 = scmp.lt.s32.totalorder %s2288_s18, %s1752_s16 }
 0x3bf   : > { %p1749_p7 = pnand %p1748_p13, %p2411_p0 }
 0x3c0   : > { %s2286_s29 = scalar_lea.hbm %s2412_s28, %s1350_s1  ;;  %s1753_s1 = scalar_lea.vmem %s1752_s16, 256 }
 0x3c1   : > { %p1750_p3 = pneg %p1749_p7  ;;  %p1755_p2 = scmp.lt.s32.totalorder %s1753_s1, %s1747_s23 }
 0x3c3   : > { %p1756_p8 = por %p1755_p2, %p1754_p5 }
 0x3c5   : > { %p1757_p11 = pnand %p1756_p8, %p1750_p3 }
 0x47f   : > { %v1107_v13 = vpop.f32.mrb[2].mxu1 }
 0x480   : > { %1111 = vst.msk [vmem:[%s548_s11] sm:$0xff] %vm570_vm1, %v1107_v13  ;;  %v1408_v14 = vpop.f32.mrb[3].mxu1 }
 0x481   : > { %1760 = shalt.err (!%p1757_p11)
}
 0x482   : > { %s1761_s22 = scalar_lea.hbm %s2286_s29, 128  ;;  %s1765_s12 = scalar_lea.hbm %s2412_s28, 256 }
 0x483   : > { %p1762_p12 = scmp.ne.s32.totalorder %s2286_s29, %s1761_s22  ;;  %p1766_p10 = scmp.lt.u32.totalorder %s2286_s29, %s2412_s28 }
 0x484   : > { %p1767_p4 = scmp.lt.u32.totalorder %s1765_s12, %s1761_s22  ;;  %p1769_p13 = scmp.lt.u32.totalorder %s1761_s22, %s2286_s29 }
 0x485   : > { %p1763_p1 = pnand %p1762_p12, %p2411_p0 }
 0x486   : > { %p1768_p9 = por %p1767_p4, %p1766_p10 }
 0x487   : > { %p1764_p6 = pneg %p1763_p1 }
 0x488   : > { %p1770_p7 = por %p1769_p13, %p1768_p9 }
 0x48a   : > { %p1771_p3 = pnand %p1770_p7, %p1764_p6 }
 0x48c   : > { %1774 = shalt.err (!%p1771_p3)
}
 0x48d   : > { %1445 = dma.vmem_to_hbm [thread:$0]  (%p2411_p0), %s2288_s18, 128, %s2286_s29, %s1114_s17  }
 0x48e PF: > { %s2413_s8 = sld [smem:[#allocation24_spill]]  ;;  %s2414_s26 = sld [smem:[#allocation26_spill]] }
 0x48f   : > { %s2415_s9 = sld [smem:[#allocation25_spill]] }
 0x494   : > { %s1157_s13 = sand.u32 1, %s2413_s8   ;;  %p2416_p5 = scmp.ne.s32.totalorder %s2414_s26, 0 }
 0x495   : > { %p2417_p2 = scmp.ge.s32.totalorder %s2415_s9, 2  ;;  %s1158_s11 = scalar_lea.sflag [#allocation6], %s1157_s13 }
 0x497   : > { %p1470_p8 = pnand %p2417_p2, %p2416_p5 }
 0x499   : > { %1808 = dma.done.wait (!%p1470_p8), %s1158_s11, 128  }
 0x49a   : > { %1810 = vsyncadd (!%p1470_p8), %s1158_s11, 4294967168  ;;  %s1167_s3 = scalar_lea.sflag [#allocation17], %s1157_s13 }
 0x49b   : > { %1812 = dma.done.wait (!%p1470_p8), %s1167_s3, 128  }
 0x49c   : > { %1814 = vsyncadd (!%p1470_p8), %s1167_s3, 4294967168  ;;  %s2418_s26 = sld [smem:[#allocation27_spill]]  ;;  %s2419_s20 = sld [smem:[#allocation28_spill]] }
 0x49d   : > { %s2420_s23 = smov %s1821_s24  ;;  %s2421_s24 = smov %s1825_s25 }
 0x4a2   : > { %p35_p0 = scmp.ge.s32.totalorder %s2418_s26, 4   ;;  %s2422_s25 = smov %s2419_s20 }
 0x4a4   :  { %37 = sbr.rel (!%p35_p0) target bundleno = 19 (0x13), region = 162 }
 0x4ab   :  { %1172 = vsyncpa [#allocation5], 1 }
 0x4ac   :  { %1174 = vsyncpa [#allocation5 + $0x1], 1 }
 0x4ad   :  { %1175 = vsyncpa [#allocation8], 1 }
 0x4ae   :  { %1177 = vsyncpa [#allocation8 + $0x1], 1 }
 0x4af   :  { %1178 = vsyncpa [#allocation11], 1 }
 0x4b0   :  { %1179 = vsyncpa [#allocation14], 1 }
 0x4b1   :  { %1180 = vsyncpa [#allocation6], 1 }
 0x4b2   :  { %1182 = vsyncpa [#allocation6 + $0x1], 1 }
 0x4b3   :  { %1183 = vsyncpa [#allocation17], 1 }
 0x4b4   :  { %1185 = vsyncpa [#allocation17 + $0x1], 1 }

</bundles_post_ra>
